<compile_context>
chip_gen: v6e
topology: v6e:2x2x1
jax: 0.10.0
libtpu: 0.0.40
codegen_flags: <defaults>
</compile_context>

<pallas_src>
import jax
import jax.numpy as jnp
from jax.experimental import pallas as pl
from jax.experimental.pallas import tpu as pltpu


def _make_normalize_kernel(inv, bias):
    """Kernel computing o = x * inv + bias; math in f32, store in o_ref.dtype."""
    inv = float(inv)
    bias = float(bias)

    def kernel(x_ref, o_ref):
        x = x_ref[...].astype(jnp.float32)
        o_ref[...] = (x * inv + bias).astype(o_ref.dtype)

    return kernel


def _device_kind():
    try:
        return jax.devices()[0].device_kind.lower()
    except Exception:
        return ""


def _block_pair_budget_bytes():
    # Budget for one (input block + output block) pair. The pipeline double-
    # buffers, so resident VMEM is ~2x this. v5e scoped-VMEM default is 16 MiB;
    # v6e/v7x default to 32 MiB.
    if "v5" in _device_kind():
        return 5 * 2**20      # ~10 MiB double-buffered, safe under 16 MiB
    return 8 * 2**20          # ~16 MiB double-buffered, safe under 32 MiB


def _sublane_multiple(dtype):
    itemsize = jnp.dtype(dtype).itemsize
    # f32 -> 8, bf16 -> 16, int8/fp8 -> 32 rows per packed sublane group.
    return max(8, 8 * (4 // max(1, itemsize)))


def _choose_row_tile(rows, lanes, in_dtype, out_dtype):
    sub = max(_sublane_multiple(in_dtype), _sublane_multiple(out_dtype))
    pair_row_bytes = lanes * (jnp.dtype(in_dtype).itemsize + jnp.dtype(out_dtype).itemsize)
    total_pair_bytes = rows * pair_row_bytes

    budget = _block_pair_budget_bytes()
    tr = max(sub, (budget // pair_row_bytes) // sub * sub)

    # Keep >= 4 grid steps for non-tiny tensors so the output writeback of step
    # i-1 overlaps with the input prefetch of step i+1 (never collapse a >0.5 MiB
    # tensor into a single serial DMA->compute->DMA block).
    if total_pair_bytes > (512 << 10) and rows >= 4 * sub:
        tr = min(tr, max(sub, (rows // 4) // sub * sub))

    if tr >= rows:
        return rows  # single full block: second-to-last dim == full dim, always legal

    # Prefer a tile that divides rows so the last block is not masked.
    if rows % tr:
        t = (tr // sub) * sub
        floor = max(sub, tr // 2)
        while t >= floor:
            if rows % t == 0:
                return t
            t -= sub
    return tr


def _row_axis_semantics(num_steps):
    kind = _device_kind()
    if (num_steps >= 2 and ("v7" in kind or "7x" in kind)
            and hasattr(pltpu, "CORE_PARALLEL")):
        # v7x: 2 TensorCores per chip -> shard the row axis across both cores.
        return (pltpu.CORE_PARALLEL,)
    return ("parallel",)


def _run_kernel(x2d, out_dtype, inv, bias):
    rows, lanes = x2d.shape
    tr = _choose_row_tile(rows, lanes, x2d.dtype, out_dtype)
    grid = (pl.cdiv(rows, tr),)
    kernel = _make_normalize_kernel(inv, bias)
    return pl.pallas_call(
        kernel,
        out_shape=jax.ShapeDtypeStruct((rows, lanes), out_dtype),
        grid_spec=pltpu.PrefetchScalarGridSpec(
            num_scalar_prefetch=0,
            grid=grid,
            in_specs=[pl.BlockSpec((tr, lanes), lambda i: (i, 0))],
            out_specs=pl.BlockSpec((tr, lanes), lambda i: (i, 0)),
        ),
        compiler_params=pltpu.CompilerParams(
            dimension_semantics=_row_axis_semantics(grid[0]),
        ),
    )(x2d)


def normalization(x, mean, sigma):
    """Pallas equivalent of Normalization.forward for tensor inputs.

    x:     jnp array (any shape; NCHW in the reference module).
    mean:  python scalar (fixed at module init).
    sigma: python scalar (fixed at module init).
    """
    orig_shape = x.shape
    in_dtype = x.dtype
    # Float in -> same float out; int in -> float32 out (torch scalar promotion).
    out_dtype = in_dtype if jnp.issubdtype(in_dtype, jnp.floating) else jnp.float32

    # Fold (x - mean)/sigma into one FMA with compile-time scalars.
    # Note: mean/sigma must be concrete Python scalars (they are, per module init).
    inv = 1.0 / float(sigma)
    bias = -float(mean) * inv

    n = x.size
    if n == 0:
        return jnp.zeros(orig_shape, out_dtype)

    if n % 128 == 0:
        # Lane-dense path: widest 128-multiple lane dim dividing numel (no padding).
        lanes = next(c for c in (1024, 512, 256, 128) if n % c == 0)
        x2d = x.reshape(n // lanes, lanes)
    else:
        # Ragged path: keep the original trailing dim as the lane dim; a block
        # whose last dim equals the full array dim is always layout-legal and
        # avoids the pad + slice round trips (each a full extra HBM pass).
        last = orig_shape[-1] if len(orig_shape) >= 1 else 1
        x2d = x.reshape(n // last, last)

    rows, lanes = x2d.shape
    pair_row_bytes = lanes * (jnp.dtype(in_dtype).itemsize + jnp.dtype(out_dtype).itemsize)
    min_rows = min(rows, max(_sublane_multiple(in_dtype), _sublane_multiple(out_dtype)))
    if pair_row_bytes * min_rows > _block_pair_budget_bytes():
        # A single row tile would blow the VMEM budget (extremely wide ragged
        # trailing dim). This op is trivially fused by XLA — fall back.
        return (x.astype(jnp.float32) * inv + bias).astype(out_dtype)

    out2d = _run_kernel(x2d, out_dtype, inv, bias)
    return out2d.reshape(orig_shape)


if __name__ == "__main__":
    # Deterministic parameters (module __init__ takes scalar mean / sigma).
    mean = 0.5
    sigma = 0.25

    key = jax.random.PRNGKey(0)
    k0, k1, k2, k3, k4 = jax.random.split(key, 5)

    # Main check: small NCHW f32 tensor (batch=2, channels=4, spatial=16).
    x = jax.random.normal(k0, (2, 4, 16, 16), dtype=jnp.float32)
    out = jax.block_until_ready(normalization(x, mean, sigma))
    ref = (x - mean) / sigma
    assert out.shape == x.shape and out.dtype == x.dtype
    assert jnp.allclose(out, ref, atol=1e-5, rtol=1e-5)

    # Multi-step tiled path (grid > 1: exercises read/write DMA overlap logic).
    x_big = jax.random.normal(k1, (2, 8, 128, 128), dtype=jnp.float32)
    out_big = jax.block_until_ready(normalization(x_big, mean, sigma))
    assert jnp.allclose(out_big, (x_big - mean) / sigma, atol=1e-5, rtol=1e-5)

    # Ragged path: numel not a multiple of 128 (no pad/slice round trips).
    x_odd = jax.random.normal(k2, (3, 5, 7), dtype=jnp.float32)
    out_odd = jax.block_until_ready(normalization(x_odd, mean, sigma))
    assert out_odd.shape == x_odd.shape
    assert jnp.allclose(out_odd, (x_odd - mean) / sigma, atol=1e-5, rtol=1e-5)

    # Native-dtype path: bf16 stays bf16 on the wire; math widened to f32 in-kernel.
    x_bf16 = jax.random.normal(k3, (2, 4, 16, 16), dtype=jnp.bfloat16)
    out_bf16 = jax.block_until_ready(normalization(x_bf16, mean, sigma))
    ref_bf16 = ((x_bf16.astype(jnp.float32) - mean) / sigma).astype(jnp.bfloat16)
    assert out_bf16.dtype == jnp.bfloat16
    assert jnp.allclose(out_bf16.astype(jnp.float32), ref_bf16.astype(jnp.float32),
                        atol=1e-2, rtol=1e-2)

    # Integer input promotes to float32 (matches torch's float-scalar promotion).
    x_int = jax.random.randint(k4, (2, 4, 8, 16), 0, 10, dtype=jnp.int32)
    out_int = jax.block_until_ready(normalization(x_int, mean, sigma))
    assert out_int.dtype == jnp.float32
    assert jnp.allclose(out_int, (x_int.astype(jnp.float32) - mean) / sigma,
                        atol=1e-5, rtol=1e-5)

    # TODO(synk): the non-Tensor branch (x.normalize(mean, sigma) on a custom
    # abstract-domain object) has no array semantics to translate.
    print("KERNEL_OK")
</pallas_src>

<mosaic_0001>
module attributes {stable_mosaic.version = 11 : i64} {
  func.func @kernel(%arg0: i32, %arg1: memref<2x1024xf32, #tpu.memory_space<vmem>>, %arg2: memref<2x1024xf32, #tpu.memory_space<vmem>>) attributes {dimension_semantics = [#tpu.dimension_semantics<parallel>], iteration_bounds = array<i64: 1>, scalar_prefetch = 0 : i64, scratch_operands = 0 : i64, tpu.core_type = #tpu.core_type<tc>, window_params = [{transform_indices = @transform_0, window_bounds = array<i64: 2, 1024>}, {transform_indices = @transform_1, window_bounds = array<i64: 2, 1024>}]} {
    %c0 = arith.constant 0 : index
    %c0_0 = arith.constant 0 : index
    %0 = vector.load %arg1[%c0, %c0_0] : memref<2x1024xf32, #tpu.memory_space<vmem>>, vector<2x1024xf32>
    %cst = arith.constant 4.000000e+00 : f32
    %1 = vector.broadcast %cst : f32 to vector<2x1024xf32>
    %2 = arith.mulf %0, %1 : vector<2x1024xf32>
    %cst_1 = arith.constant -2.000000e+00 : f32
    %3 = vector.broadcast %cst_1 : f32 to vector<2x1024xf32>
    %4 = arith.addf %2, %3 : vector<2x1024xf32>
    %c0_2 = arith.constant 0 : index
    %c0_3 = arith.constant 0 : index
    %5 = vector.load %arg2[%c0_2, %c0_3] : memref<2x1024xf32, #tpu.memory_space<vmem>>, vector<2x1024xf32>
    tpu.vector_store %arg2[%c0_2, %c0_3], %4 {strides = array<i32>} : memref<2x1024xf32, #tpu.memory_space<vmem>>, vector<2x1024xf32>,
    return
  }
  func.func @transform_0(%arg0: i32) -> (i32, i32) {
    %c0_i32 = arith.constant 0 : i32
    %c0_i32_0 = arith.constant 0 : i32
    return %arg0, %c0_i32 : i32, i32
  }
  func.func @transform_1(%arg0: i32) -> (i32, i32) {
    %c0_i32 = arith.constant 0 : i32
    %c0_i32_0 = arith.constant 0 : i32
    return %arg0, %c0_i32 : i32, i32
  }
}

</mosaic_0001>

<bundles_post_ra>
// kernel: tpu_custom_call.1
= control target key start
LH: loop header
LB: loop body
LE: loop exit
PB: predicated region body
PF: predicated region fallthrough
CT: control target
= control target key end

     0   :  { %6 = vsyncpa [#allocation3], 0  ;;  %s108_s0 = inlined_call_operand.hbm [shape: f32[2,1024], index: 0, kind: input, shape index: {}]   ;;  %s109_s1 = inlined_call_operand.hbm [shape: f32[2,1024], index: 1, kind: output, shape index: {}]  }
   0x1   :  { %7 = vsyncpa [#allocation4], 0  ;;  %s90_s6 = smov [#allocation2]  }
   0x2   :  { %s14_s7 = sshll.u32 %s90_s6, 4  ;;  %s15_s7 = int_to_ptr.vmem [resolvable:$true] %s14_s7 }
   0x3   :  { %s54_s8 = scalar_lea.vmem %s15_s7, 256  ;;  %p59_p1 = scmp.lt.s32.totalorder %s15_s7, %s15_s7 }
   0x4   :  { %p55_p0 = scmp.ne.s32.totalorder %s15_s7, %s54_s8  ;;  %p60_p2 = scmp.lt.s32.totalorder %s54_s8, %s54_s8 }
   0x6   :  { %p61_p3 = por %p60_p2, %p59_p1 }
   0x8   :  { %p62_p4 = pnand %p61_p3, %p55_p0 }
   0xa   :  { %65 = shalt.err (!%p62_p4)
}
   0xb   :  { %17 = dma.hbm_to_vmem [thread:$0]  %s108_s0, 256, %s15_s7, [#allocation3]  }
   0xc   :  { %86 = dma.done.wait [#allocation3], 256  }
   0xd   :  { %87 = vsyncadd [#allocation3], 4294967040  ;;  %v21_v0 = vld [vmem:[#allocation2] sm:$0xff]  ;;  %v22_v1 = vld [vmem:[#allocation2 + $0x8] sm:$0xff]  ;;  %s91_s11 = smov [#allocation5]  }
   0xe   :  { %s35_s12 = sshll.u32 %s91_s11, 4  ;;  %v23_v2 = vmul.f32 4.0, %v21_v0  ;;  %v24_v3 = vmul.f32 4.0, %v22_v1  ;;  %s36_s12 = int_to_ptr.vmem [resolvable:$true] %s35_s12 }
   0xf   :  { %s66_s13 = scalar_lea.vmem %s36_s12, 256  ;;  %p71_p6 = scmp.lt.s32.totalorder %s36_s12, %s36_s12 }
  0x10   :  { %v25_v4 = vadd.f32 -2.0, %v23_v2  ;;  %v26_v5 = vadd.f32 -2.0, %v24_v3  ;;  %p67_p5 = scmp.ne.s32.totalorder %s36_s12, %s66_s13  ;;  %p72_p7 = scmp.lt.s32.totalorder %s66_s13, %s66_s13 }
  0x12   :  { %27 = vst [vmem:[#allocation5] sm:$0xff] %v25_v4  ;;  %28 = vst [vmem:[#allocation5 + $0x8] sm:$0xff] %v26_v5  ;;  %p73_p8 = por %p72_p7, %p71_p6 }
  0x14   :  { %p74_p9 = pnand %p73_p8, %p67_p5 }
  0x16   :  { %77 = shalt.err (!%p74_p9)
}
  0x17   :  { %38 = dma.vmem_to_hbm [thread:$0]  %s36_s12, 256, %s109_s1, [#allocation4]  }
  0x18   :  { %88 = dma.done.wait [#allocation4], 256  }
  0x19   :  { %89 = vsyncadd [#allocation4], 4294967040 }
  0x1a   :  { %42 = vsyncpa [#allocation3], 1 }
  0x1b   :  { %43 = vsyncpa [#allocation4], 1 }

</bundles_post_ra>
